<compile_context>
chip_gen: v7x
topology: tpu7x:2x2x1
jax: 0.10.0
libtpu: 0.0.40
codegen_flags: <defaults>
</compile_context>

<pallas_src>
import functools

import jax
import jax.numpy as jnp
import numpy as np
from jax.experimental import pallas as pl
from jax.experimental.pallas import tpu as pltpu

LANE = 128
SUBLANE = 8
# 4096 rows x 128 lanes x 4 B = 2 MiB per block (per buffer).
_MAX_BLOCK_ROWS = 4096


def _round_up(n: int, m: int) -> int:
    return ((n + m - 1) // m) * m


# ----------------------------------------------------------------------------
# Pallas kernel: bit-level float quantization (elementwise on a VMEM tile)
# ----------------------------------------------------------------------------
def _make_quant_kernel(exp_bits: int, man_bits: int):
    do_round = man_bits < 23   # mantissa rounding needed
    do_clip = exp_bits < 8     # exponent-range clipping needed

    def kernel(x_ref, o_ref):
        q = pltpu.bitcast(x_ref[...], jnp.uint32)

        if do_round:
            # Round-to-nearest on the top `man_bits` mantissa bits:
            # add half-ULP of the target format, then truncate.
            half = jnp.uint32(1 << (23 - man_bits - 1))
            mask = jnp.uint32((~((1 << (23 - man_bits)) - 1)) & 0xFFFFFFFF)
            q = (q + half) & mask

        if do_clip:
            sign = q & jnp.uint32(0x80000000)
            exp_field = (q >> jnp.uint32(23)) & jnp.uint32(0xFF)
            max_exp_store = (1 << (exp_bits - 1)) - 1 + 127
            min_exp_store = -((1 << (exp_bits - 1)) - 2) + 127
            mm = min(man_bits, 23)
            max_man = ((1 << mm) - 1) << (23 - mm)
            max_num = jnp.uint32((max_exp_store << 23) | max_man)
            overflow = exp_field > jnp.uint32(max_exp_store)
            underflow = exp_field < jnp.uint32(min_exp_store)
            # overflow  -> clamp to largest representable magnitude (keep sign)
            # underflow -> flush to signed zero
            # TODO(synk): CPDtorch's CUDA kernel handles gradual subnormals via
            # an add/subtract shift trick; here underflow is flushed to zero.
            q = jnp.where(overflow, sign | max_num, q)
            q = jnp.where(underflow, sign, q)

        o_ref[...] = pltpu.bitcast(q, jnp.float32)

    return kernel


# ----------------------------------------------------------------------------
# Wrapper: flatten -> (rows, 128) slab -> tiled pallas_call (big blocks)
# ----------------------------------------------------------------------------
@functools.partial(
    jax.jit, static_argnames=("exp_bits", "man_bits", "max_block_rows"))
def _float_quantize_impl(x, exp_bits: int, man_bits: int,
                         max_block_rows: int = _MAX_BLOCK_ROWS):
    orig_shape = x.shape
    orig_dtype = x.dtype

    xf = x if x.dtype == jnp.float32 else x.astype(jnp.float32)
    xf = xf.reshape(-1)
    n = xf.shape[0]

    # Pad only when numel is not a multiple of one (8,128) tile; for typical
    # NN tensor sizes this is a no-op, avoiding the extra HBM round trip of a
    # full-tensor pad + output slice.
    tile = SUBLANE * LANE
    n_pad = _round_up(n, tile)
    padded = n_pad != n
    if padded:
        xf = jnp.pad(xf, (0, n_pad - n))
    rows = n_pad // LANE                       # multiple of 8 by construction
    x2d = xf.reshape(rows, LANE)

    block_rows = _round_up(min(max_block_rows, rows), SUBLANE)
    grid = (pl.cdiv(rows, block_rows),)        # edge block masked by Pallas

    out2d = pl.pallas_call(
        _make_quant_kernel(exp_bits, man_bits),
        out_shape=jax.ShapeDtypeStruct((rows, LANE), jnp.float32),
        grid=grid,
        in_specs=[pl.BlockSpec((block_rows, LANE), lambda i: (i, 0))],
        out_specs=pl.BlockSpec((block_rows, LANE), lambda i: (i, 0)),
        compiler_params=pltpu.CompilerParams(
            dimension_semantics=("parallel",)),
    )(x2d)

    out = out2d.reshape(-1)
    if padded:
        out = out[:n]
    out = out.reshape(orig_shape)
    if orig_dtype != jnp.float32:
        out = out.astype(orig_dtype)
    return out


def float_quantize(x, exp_bits: int, man_bits: int):
    # Identity short-circuit (exp>=8, man>=23): plain fp32, no kernel launch,
    # no HBM traffic — matches CPDtorch's own fast path for (8, 23).
    if exp_bits >= 8 and man_bits >= 23:
        return x
    return _float_quantize_impl(x, exp_bits, man_bits)


class Quantizer:
    """JAX/Pallas equivalent of CPDtorch Quantizer (forward path only)."""

    def __init__(self, forward_exp=8, forward_man=23,
                 backward_exp=8, backward_man=23):
        # backward_* only affect the autograd backward pass in PyTorch;
        # forward semantics depend on forward_exp / forward_man only.
        self.forward_exp = int(forward_exp)
        self.forward_man = int(forward_man)

    def __call__(self, x):
        return float_quantize(x, self.forward_exp, self.forward_man)


# ----------------------------------------------------------------------------
# Pure-numpy reference of the same bit algorithm (for verification)
# ----------------------------------------------------------------------------
def ref_quantize(x_np, exp_bits, man_bits):
    x_np = np.asarray(x_np, np.float32)
    q = x_np.reshape(-1).view(np.uint32).astype(np.uint64)
    if man_bits < 23:
        half = 1 << (23 - man_bits - 1)
        mask = (~((1 << (23 - man_bits)) - 1)) & 0xFFFFFFFF
        q = (q + half) & mask
    if exp_bits < 8:
        sign = q & 0x80000000
        exp_field = (q >> 23) & 0xFF
        max_exp_store = (1 << (exp_bits - 1)) - 1 + 127
        min_exp_store = -((1 << (exp_bits - 1)) - 2) + 127
        mm = min(man_bits, 23)
        max_man = ((1 << mm) - 1) << (23 - mm)
        max_num = (max_exp_store << 23) | max_man
        q = np.where(exp_field > max_exp_store, sign | max_num, q)
        q = np.where(exp_field < min_exp_store, sign, q)
    return q.astype(np.uint32).view(np.float32).reshape(x_np.shape)


if __name__ == "__main__":
    key = jax.random.PRNGKey(0)
    k1, k2, k3 = jax.random.split(key, 3)

    # NCHW input, as a PyTorch conv feature map would be.
    x = jax.random.normal(k1, (2, 4, 16, 16), dtype=jnp.float32)

    # 1) Default Quantizer() == fp32 passthrough (identity), exactly as
    #    CPDtorch: now short-circuited in the wrapper (no kernel call).
    q_default = Quantizer()
    y_default = jax.block_until_ready(q_default(x))
    assert y_default.shape == x.shape and y_default.dtype == x.dtype
    assert bool(jnp.array_equal(y_default, x)), "default (8,23) must be identity"

    # 2) Low-precision config (e5m2-like) exercising the real quantization path.
    q_low = Quantizer(forward_exp=5, forward_man=2)
    y_low = jax.block_until_ready(q_low(x))
    y_ref = ref_quantize(np.asarray(x), 5, 2)
    assert np.array_equal(np.asarray(y_low), y_ref), "kernel != reference bits"

    # 3) Non-(8,128)-aligned element count -> exercises the pad/slice path.
    x3 = jax.random.normal(k2, (3, 5, 7), dtype=jnp.float32)
    y3 = jax.block_until_ready(float_quantize(x3, 5, 2))
    assert np.array_equal(np.asarray(y3), ref_quantize(np.asarray(x3), 5, 2))

    # 4) Multi-block grid with a partial final block (forced tiny block size)
    #    -> validates the cdiv-grid edge-masking used for large tensors.
    x4 = jax.random.normal(k3, (3, 1024), dtype=jnp.float32)   # rows = 24
    y4 = jax.block_until_ready(_float_quantize_impl(x4, 5, 2, max_block_rows=16))
    assert np.array_equal(np.asarray(y4), ref_quantize(np.asarray(x4), 5, 2))

    print("KERNEL_OK")
</pallas_src>

<mosaic_0001>
module attributes {stable_mosaic.version = 11 : i64} {
  func.func @kernel(%arg0: i32, %arg1: memref<16x128xf32, #tpu.memory_space<vmem>>, %arg2: memref<16x128xf32, #tpu.memory_space<vmem>>) attributes {dimension_semantics = [#tpu.dimension_semantics<parallel>], iteration_bounds = array<i64: 1>, scalar_prefetch = 0 : i64, scratch_operands = 0 : i64, tpu.core_type = #tpu.core_type<tc>, window_params = [{transform_indices = @transform_0, window_bounds = array<i64: 16, 128>}, {transform_indices = @transform_1, window_bounds = array<i64: 16, 128>}]} {
    %c0 = arith.constant 0 : index
    %c0_0 = arith.constant 0 : index
    %0 = vector.load %arg1[%c0, %c0_0] : memref<16x128xf32, #tpu.memory_space<vmem>>, vector<16x128xf32>
    %1 = tpu.bitcast %0 : vector<16x128xf32> -> vector<16x128xi32>
    %c1048576_i32 = arith.constant 1048576 : i32
    %2 = vector.broadcast %c1048576_i32 : i32 to vector<16x128xi32>
    %3 = arith.addi %1, %2 : vector<16x128xi32>
    %c-2097152_i32 = arith.constant -2097152 : i32
    %4 = vector.broadcast %c-2097152_i32 : i32 to vector<16x128xi32>
    %5 = arith.andi %3, %4 : vector<16x128xi32>
    %c-2147483648_i32 = arith.constant -2147483648 : i32
    %6 = vector.broadcast %c-2147483648_i32 : i32 to vector<16x128xi32>
    %7 = arith.andi %5, %6 : vector<16x128xi32>
    %c23_i32 = arith.constant 23 : i32
    %8 = vector.broadcast %c23_i32 : i32 to vector<16x128xi32>
    %9 = arith.shrui %5, %8 : vector<16x128xi32>
    %c255_i32 = arith.constant 255 : i32
    %10 = vector.broadcast %c255_i32 : i32 to vector<16x128xi32>
    %11 = arith.andi %9, %10 : vector<16x128xi32>
    %c142_i32 = arith.constant 142 : i32
    %12 = vector.broadcast %c142_i32 : i32 to vector<16x128xi32>
    %13 = arith.cmpi ugt, %11, %12 : vector<16x128xi32>
    %c113_i32 = arith.constant 113 : i32
    %14 = vector.broadcast %c113_i32 : i32 to vector<16x128xi32>
    %15 = arith.cmpi ult, %11, %14 : vector<16x128xi32>
    %c1197473792_i32 = arith.constant 1197473792 : i32
    %16 = vector.broadcast %c1197473792_i32 : i32 to vector<16x128xi32>
    %17 = arith.ori %7, %16 : vector<16x128xi32>
    %18 = arith.select %13, %17, %5 : vector<16x128xi1>, vector<16x128xi32>
    %19 = arith.select %15, %7, %18 : vector<16x128xi1>, vector<16x128xi32>
    %20 = tpu.bitcast %19 : vector<16x128xi32> -> vector<16x128xf32>
    %c0_1 = arith.constant 0 : index
    %c0_2 = arith.constant 0 : index
    %21 = vector.load %arg2[%c0_1, %c0_2] : memref<16x128xf32, #tpu.memory_space<vmem>>, vector<16x128xf32>
    tpu.vector_store %arg2[%c0_1, %c0_2], %20 {strides = array<i32>} : memref<16x128xf32, #tpu.memory_space<vmem>>, vector<16x128xf32>,
    return
  }
  func.func @transform_0(%arg0: i32) -> (i32, i32) {
    %c0_i32 = arith.constant 0 : i32
    %c0_i32_0 = arith.constant 0 : i32
    return %arg0, %c0_i32 : i32, i32
  }
  func.func @transform_1(%arg0: i32) -> (i32, i32) {
    %c0_i32 = arith.constant 0 : i32
    %c0_i32_0 = arith.constant 0 : i32
    return %arg0, %c0_i32 : i32, i32
  }
}

</mosaic_0001>

<bundles_post_ra>
// kernel: _float_quantize_impl.1
= control target key start
LH: loop header
LB: loop body
LE: loop exit
PB: predicated region body
PF: predicated region fallthrough
CT: control target
= control target key end

     0   :  { %s62_s0 = inlined_call_operand.vmem [shape: f32[16,128], index: 0, kind: input, shape index: {}]   ;;  %s63_s1 = inlined_call_operand.vmem [shape: f32[16,128], index: 1, kind: output, shape index: {}]  }
   0x1   :  { %v8_v0 = vld [vmem:[%s62_s0] sm:$0xff]  ;;  %v9_v1 = vld [vmem:[%s62_s0 + $0x8] sm:$0xff] }
   0x2   :  { %v12_v2 = vadd.s32 1048576, %v8_v0  ;;  %v13_v3 = vadd.s32 1048576, %v9_v1 }
   0x4   :  { %v14_v4 = vand.u32 4292870144, %v12_v2  ;;  %v15_v5 = vand.u32 4292870144, %v13_v3 }
   0x6   :  { %v16_v6 = vand.u32 2147483648, %v14_v4  ;;  %v18_v7 = vshrl.u32 %v14_v4, 23  ;;  %v17_v8 = vand.u32 2147483648, %v15_v5  ;;  %v19_v9 = vshrl.u32 %v15_v5, 23 }
   0x8   :  { %v20_v10 = vand.u32 255, %v18_v7  ;;  %v26_v11 = vor.u32 1197473792, %v16_v6  ;;  %v21_v12 = vand.u32 255, %v19_v9  ;;  %v27_v13 = vor.u32 1197473792, %v17_v8 }
   0xa   :  { %vm22_vm0 = vcmp.gt.u32.totalorder %v20_v10, 142  ;;  %vm24_vm1 = vcmp.lt.u32.totalorder %v20_v10, 113  ;;  %vm23_vm2 = vcmp.gt.u32.totalorder %v21_v12, 142  ;;  %vm25_vm3 = vcmp.lt.u32.totalorder %v21_v12, 113 }
   0xb   :  { %v28_v14 = vsel %vm22_vm0, %v26_v11, %v14_v4  ;;  %v29_v15 = vsel %vm23_vm2, %v27_v13, %v15_v5 }
   0xc   :  { %v30_v16 = vsel %vm24_vm1, %v16_v6, %v28_v14  ;;  %v31_v17 = vsel %vm25_vm3, %v17_v8, %v29_v15 }
   0xd   :  { %34 = vst [vmem:[%s63_s1] sm:$0xff] %v30_v16  ;;  %35 = vst [vmem:[%s63_s1 + $0x8] sm:$0xff] %v31_v17 }

</bundles_post_ra>
